<compile_context>
chip_gen: v7x
topology: tpu7x:2x2x1
jax: 0.10.0
libtpu: 0.0.40
codegen_flags: <defaults>
</compile_context>

<pallas_src>
import functools

import jax
import jax.numpy as jnp
from jax import lax
from jax.experimental import pallas as pl
from jax.experimental.pallas import tpu as pltpu

LANE = 128  # TPU lane width; every feature-like dim is padded to this.


# ----------------------------- Pallas kernel --------------------------------

def policy_kernel(bits_ref, x_ref, w13_ref, w2_ref, b_ref,
                  logits_ref, logp_ref, misc_ref,
                  *, num_actions, in_p, hid_p, ft_p):
    # Static, tile-aligned slices of the packed weight / bias buffers.
    w1 = w13_ref[0:in_p, :]                       # (in_p, LANE)   bf16
    w3 = w13_ref[in_p:in_p + ft_p, :]             # (ft_p, LANE)   bf16
    b1 = b_ref[:, 0:hid_p]                        # (1, hid_p)     f32
    b2 = b_ref[:, hid_p:hid_p + ft_p]             # (1, ft_p)      f32
    b3 = b_ref[:, hid_p + ft_p:hid_p + ft_p + LANE]  # (1, LANE)   f32

    # ---- 3-layer MLP: bf16 MXU inputs, f32 accumulation, f32 elementwise ----
    x = x_ref[...]                                                  # bf16 (B, in_p)
    h1 = jnp.dot(x, w1, preferred_element_type=jnp.float32) + b1
    h1 = jnp.maximum(h1, 0.0)
    h2 = jnp.dot(h1.astype(jnp.bfloat16), w2_ref[...],
                 preferred_element_type=jnp.float32) + b2
    h2 = jnp.maximum(h2, 0.0)
    logits = jnp.dot(h2.astype(jnp.bfloat16), w3,
                     preferred_element_type=jnp.float32) + b3
    logits_ref[...] = logits                                        # f32 (B, LANE)

    # ---- Policy.sample(): clamp(-20, 2) -> Categorical log-probs ----
    lane = lax.broadcasted_iota(jnp.int32, logits.shape, 1)
    valid = lane < num_actions
    neg_inf = jnp.float32(-jnp.inf)
    pad_idx = jnp.int32(logits.shape[-1])

    cl = jnp.where(valid, jnp.clip(logits, -20.0, 2.0), neg_inf)    # mask AFTER clamp
    m = jnp.max(cl, axis=-1, keepdims=True)
    z = cl - m                                                      # -inf on padded lanes
    denom = jnp.sum(jnp.exp(z), axis=-1, keepdims=True)             # exp(-inf)=0, no select
    logp = z - jnp.log(denom)                                       # -inf on padded lanes
    logp_ref[...] = logp

    # ---- greedy action: argmax of clamped logits (first index on ties) ----
    greedy_idx = jnp.min(jnp.where(cl >= m, lane, pad_idx),
                         axis=-1, keepdims=True)

    # ---- stochastic draw: Gumbel-max over the clamped categorical ----
    bits = bits_ref[...]                                            # uint32 (B, LANE)
    # exponent trick: u in [1,2) via mantissa bits, then shift to [0,1).
    u = lax.bitcast_convert_type((bits >> 9) | jnp.uint32(0x3F800000),
                                 jnp.float32) - 1.0
    # u == 0 (prob 2^-23 per lane) -> gumbel = -inf: that lane just never wins.
    gumbel = -jnp.log(-jnp.log(u))
    pert = logp + gumbel                                            # padded lanes stay -inf
    max_p = jnp.max(pert, axis=-1, keepdims=True)
    samp_idx = jnp.min(jnp.where(pert >= max_p, lane, pad_idx),
                       axis=-1, keepdims=True)
    samp_logp = jnp.max(jnp.where(lane == samp_idx, logp, neg_inf),
                        axis=-1, keepdims=True)

    # ---- pack the three per-row scalars into one lane-dense (B, LANE) tile ----
    # lane 0: sampled action (as float, exact), lane 1: its log-prob,
    # lane 2: greedy action (as float), remaining lanes: 0.
    misc = (jnp.where(lane == 0, samp_idx.astype(jnp.float32), 0.0)
            + jnp.where(lane == 1, samp_logp, 0.0)
            + jnp.where(lane == 2, greedy_idx.astype(jnp.float32), 0.0))
    misc_ref[...] = misc


# ------------------------------- wrapper -------------------------------------

def policy_forward(state, params, key, *, num_actions):
    """Fused Policy forward + sample() on TPU (single gridless pallas_call)."""
    assert num_actions <= LANE
    w13, w2, b_all = params
    batch = state.shape[0]
    hid_p, ft_p = w2.shape
    in_p = w13.shape[0] - ft_p

    # Pad the state feature dim to a full lane tile, cast to bf16 for the MXU.
    x = jnp.pad(state, ((0, 0), (0, in_p - state.shape[1]))).astype(jnp.bfloat16)
    # Random bits generated inside the same jit (hardware PRNG primitives have
    # no interpret-mode lowering); converted to uniforms inside the kernel.
    bits = jax.random.bits(key, (batch, LANE), jnp.uint32)

    vmem = pl.BlockSpec(memory_space=pltpu.MemorySpace.VMEM)
    out_shapes = (
        jax.ShapeDtypeStruct((batch, LANE), jnp.float32),  # logits (padded lanes 0)
        jax.ShapeDtypeStruct((batch, LANE), jnp.float32),  # log-probs (padded -inf)
        jax.ShapeDtypeStruct((batch, LANE), jnp.float32),  # packed scalars
    )
    logits_p, logp_p, misc = pl.pallas_call(
        functools.partial(policy_kernel, num_actions=num_actions,
                          in_p=in_p, hid_p=hid_p, ft_p=ft_p),
        out_shape=out_shapes,
        in_specs=[vmem] * 5,
        out_specs=(vmem, vmem, vmem),
    )(bits, x, w13, w2, b_all)

    samp_act = misc[:, 0].astype(jnp.int32)
    samp_logp = misc[:, 1]
    greedy_act = misc[:, 2].astype(jnp.int32)
    return (logits_p[:, :num_actions], logp_p[:, :num_actions],
            samp_act, samp_logp, greedy_act)

# TODO(synk): for a small-batch actor loop with frozen weights, keep the
# packed weight buffers VMEM-resident across steps (cross-call prefetch /
# persistent scratch) so the ~290 KiB weight DMA is not paid every call.
# TODO(synk): for the large-batch learner path, add a 1-D batch grid (>=256-row
# blocks, weights resident via index_map lambda i: (0, 0)) with
# dimension_semantics=("parallel",) to engage both v7x TensorCores.


# ----------------------------- parameter init -------------------------------

def _round_up(n, m=LANE):
    return ((n + m - 1) // m) * m


def xavier_uniform(key, fan_in, fan_out):
    bound = jnp.sqrt(6.0 / (fan_in + fan_out))
    return jax.random.uniform(key, (fan_in, fan_out), jnp.float32, -bound, bound)


def init_params(key, num_inputs, hidden, ft_out, num_actions):
    """weights_init_: xavier_uniform_ weights, zero biases.

    Stored 128-padded and packed: w13 = [w1; w3] (both have 128-wide last dim),
    b_all = [b1 | b2 | b3]; weights bf16, biases f32.
    """
    k1, k2, k3 = jax.random.split(key, 3)
    in_p, hid_p, ft_p, act_p = (_round_up(num_inputs), _round_up(hidden),
                                _round_up(ft_out), _round_up(num_actions))
    assert hid_p == LANE and act_p == LANE
    w1 = jnp.zeros((in_p, hid_p), jnp.float32).at[:num_inputs, :hidden].set(
        xavier_uniform(k1, num_inputs, hidden)).astype(jnp.bfloat16)
    w2 = jnp.zeros((hid_p, ft_p), jnp.float32).at[:hidden, :ft_out].set(
        xavier_uniform(k2, hidden, ft_out)).astype(jnp.bfloat16)
    w3 = jnp.zeros((ft_p, act_p), jnp.float32).at[:ft_out, :num_actions].set(
        xavier_uniform(k3, ft_out, num_actions)).astype(jnp.bfloat16)
    w13 = jnp.concatenate([w1, w3], axis=0)                     # (in_p+ft_p, 128) bf16
    b_all = jnp.zeros((1, hid_p + ft_p + act_p), jnp.float32)   # (1, 768) f32
    return (w13, w2, b_all)


# ----------------------------- pure-JAX reference ----------------------------

def reference_forward(state, params, num_actions):
    w13, w2, b_all = params
    hid_p, ft_p = w2.shape
    in_p = w13.shape[0] - ft_p
    w1, w3 = w13[:in_p], w13[in_p:]
    b1 = b_all[:, :hid_p]
    b2 = b_all[:, hid_p:hid_p + ft_p]
    b3 = b_all[:, hid_p + ft_p:]
    x = jnp.pad(state, ((0, 0), (0, in_p - state.shape[1]))).astype(jnp.bfloat16)
    h1 = jnp.maximum(jnp.dot(x, w1, preferred_element_type=jnp.float32) + b1, 0.0)
    h2 = jnp.maximum(jnp.dot(h1.astype(jnp.bfloat16), w2,
                             preferred_element_type=jnp.float32) + b2, 0.0)
    logits = (jnp.dot(h2.astype(jnp.bfloat16), w3,
                      preferred_element_type=jnp.float32) + b3)[:, :num_actions]
    cl = jnp.clip(logits, -20.0, 2.0)
    return logits, jax.nn.log_softmax(cl, axis=-1)


# ----------------------------------- main ------------------------------------

if __name__ == "__main__":
    BATCH = 8
    NUM_INPUTS = 32
    HIDDEN = 64
    FT_OUT = 512          # Policy.ft_out
    NUM_ACTIONS = 6       # typical Atari action count

    key = jax.random.PRNGKey(0)
    k_state, k_params, k_sample = jax.random.split(key, 3)

    state = jax.random.normal(k_state, (BATCH, NUM_INPUTS), jnp.float32)
    params = init_params(k_params, NUM_INPUTS, HIDDEN, FT_OUT, NUM_ACTIONS)

    # Single jit: weights stay device-resident, one pallas_call per step.
    forward = jax.jit(functools.partial(policy_forward, num_actions=NUM_ACTIONS))

    logits, log_probs, samp_act, samp_logp, greedy_act = forward(state, params, k_sample)
    jax.block_until_ready((logits, log_probs, samp_act, samp_logp, greedy_act))

    # -------- checks against pure-JAX reference --------
    ref_logits, ref_logp = reference_forward(state, params, NUM_ACTIONS)
    assert jnp.allclose(logits, ref_logits, atol=1e-2, rtol=1e-2)
    assert jnp.allclose(log_probs, ref_logp, atol=1e-2, rtol=1e-2)

    # greedy action matches argmax of clamped logits
    ref_greedy = jnp.argmax(jnp.clip(ref_logits, -20.0, 2.0), axis=-1)
    assert bool(jnp.all(greedy_act == ref_greedy))

    # sampled action is valid and its reported log-prob is self-consistent
    assert bool(jnp.all((samp_act >= 0) & (samp_act < NUM_ACTIONS)))
    gathered = jnp.take_along_axis(log_probs, samp_act[:, None], axis=-1)[:, 0]
    assert jnp.allclose(samp_logp, gathered, atol=1e-5, rtol=1e-5)

    print("KERNEL_OK")
</pallas_src>

<mosaic_0001>
module attributes {stable_mosaic.version = 11 : i64} {
  func.func @policy_kernel(%arg0: memref<8x128xi32, #tpu.memory_space<vmem>>, %arg1: memref<8x128xbf16, #tpu.memory_space<vmem>>, %arg2: memref<640x128xbf16, #tpu.memory_space<vmem>>, %arg3: memref<128x512xbf16, #tpu.memory_space<vmem>>, %arg4: memref<1x768xf32, #tpu.memory_space<vmem>>, %arg5: memref<8x128xf32, #tpu.memory_space<vmem>>, %arg6: memref<8x128xf32, #tpu.memory_space<vmem>>, %arg7: memref<8x128xf32, #tpu.memory_space<vmem>>) attributes {dimension_semantics = [], scalar_prefetch = 0 : i64, scratch_operands = 0 : i64, tpu.core_type = #tpu.core_type<tc>} {
    %c0 = arith.constant 0 : index
    %c0_0 = arith.constant 0 : index
    %0 = vector.load %arg2[%c0, %c0_0] : memref<640x128xbf16, #tpu.memory_space<vmem>>, vector<128x128xbf16>
    %c128 = arith.constant 128 : index
    %c0_1 = arith.constant 0 : index
    %1 = vector.load %arg2[%c128, %c0_1] : memref<640x128xbf16, #tpu.memory_space<vmem>>, vector<512x128xbf16>
    %c0_2 = arith.constant 0 : index
    %c0_3 = arith.constant 0 : index
    %2 = vector.load %arg4[%c0_2, %c0_3] : memref<1x768xf32, #tpu.memory_space<vmem>>, vector<1x128xf32>
    %c0_4 = arith.constant 0 : index
    %c128_5 = arith.constant 128 : index
    %3 = vector.load %arg4[%c0_4, %c128_5] : memref<1x768xf32, #tpu.memory_space<vmem>>, vector<1x512xf32>
    %c0_6 = arith.constant 0 : index
    %c640 = arith.constant 640 : index
    %4 = vector.load %arg4[%c0_6, %c640] : memref<1x768xf32, #tpu.memory_space<vmem>>, vector<1x128xf32>
    %c0_7 = arith.constant 0 : index
    %c0_8 = arith.constant 0 : index
    %5 = vector.load %arg1[%c0_7, %c0_8] : memref<8x128xbf16, #tpu.memory_space<vmem>>, vector<8x128xbf16>
    %cst = arith.constant dense<0.000000e+00> : vector<8x128xf32>
    %6 = tpu.matmul %5, %0, %cst {dimension_numbers = #tpu.dot_dimension_numbers<[1], [0], [0], [1], [0, 0, 1, 1], [], []>} : vector<8x128xbf16>, vector<128x128xbf16>, vector<8x128xf32> -> vector<8x128xf32>
    %7 = vector.broadcast %2 : vector<1x128xf32> to vector<8x128xf32>
    %8 = arith.addf %6, %7 : vector<8x128xf32>
    %cst_9 = arith.constant 0.000000e+00 : f32
    %9 = vector.broadcast %cst_9 : f32 to vector<8x128xf32>
    %10 = arith.maximumf %8, %9 : vector<8x128xf32>
    %11 = arith.truncf %10 : vector<8x128xf32> to vector<8x128xbf16>
    %c0_10 = arith.constant 0 : index
    %c0_11 = arith.constant 0 : index
    %12 = vector.load %arg3[%c0_10, %c0_11] : memref<128x512xbf16, #tpu.memory_space<vmem>>, vector<128x512xbf16>
    %cst_12 = arith.constant dense<0.000000e+00> : vector<8x512xf32>
    %13 = tpu.matmul %11, %12, %cst_12 {dimension_numbers = #tpu.dot_dimension_numbers<[1], [0], [0], [1], [0, 0, 1, 1], [], []>} : vector<8x128xbf16>, vector<128x512xbf16>, vector<8x512xf32> -> vector<8x512xf32>
    %14 = vector.broadcast %3 : vector<1x512xf32> to vector<8x512xf32>
    %15 = arith.addf %13, %14 : vector<8x512xf32>
    %cst_13 = arith.constant 0.000000e+00 : f32
    %16 = vector.broadcast %cst_13 : f32 to vector<8x512xf32>
    %17 = arith.maximumf %15, %16 : vector<8x512xf32>
    %18 = arith.truncf %17 : vector<8x512xf32> to vector<8x512xbf16>
    %cst_14 = arith.constant dense<0.000000e+00> : vector<8x128xf32>
    %19 = tpu.matmul %18, %1, %cst_14 {dimension_numbers = #tpu.dot_dimension_numbers<[1], [0], [0], [1], [0, 0, 1, 1], [], []>} : vector<8x512xbf16>, vector<512x128xbf16>, vector<8x128xf32> -> vector<8x128xf32>
    %20 = vector.broadcast %4 : vector<1x128xf32> to vector<8x128xf32>
    %21 = arith.addf %19, %20 : vector<8x128xf32>
    %c0_15 = arith.constant 0 : index
    %c0_16 = arith.constant 0 : index
    %22 = vector.load %arg5[%c0_15, %c0_16] : memref<8x128xf32, #tpu.memory_space<vmem>>, vector<8x128xf32>
    tpu.vector_store %arg5[%c0_15, %c0_16], %21 {strides = array<i32>} : memref<8x128xf32, #tpu.memory_space<vmem>>, vector<8x128xf32>,
    %23 = tpu.iota {dimensions = array<i32: 1>} : vector<8x128xi32>
    %c6_i32 = arith.constant 6 : i32
    %24 = vector.broadcast %c6_i32 : i32 to vector<8x128xi32>
    %25 = arith.cmpi slt, %23, %24 : vector<8x128xi32>
    %cst_17 = arith.constant -2.000000e+01 : f32
    %cst_18 = arith.constant 2.000000e+00 : f32
    %26 = vector.broadcast %cst_17 : f32 to vector<8x128xf32>
    %27 = arith.maximumf %26, %21 : vector<8x128xf32>
    %28 = vector.broadcast %cst_18 : f32 to vector<8x128xf32>
    %29 = arith.minimumf %28, %27 : vector<8x128xf32>
    %cst_19 = arith.constant 0xFF800000 : f32
    %30 = vector.broadcast %cst_19 : f32 to vector<8x128xf32>
    %31 = arith.select %25, %29, %30 : vector<8x128xi1>, vector<8x128xf32>
    %cst_20 = arith.constant dense<0xFF800000> : vector<8xf32>
    %32 = vector.multi_reduction <maximumf>, %31, %cst_20 [1] : vector<8x128xf32> to vector<8xf32>
    %33 = vector.shape_cast %32 : vector<8xf32> to vector<8x1xf32>
    %34 = vector.broadcast %33 : vector<8x1xf32> to vector<8x128xf32>
    %35 = arith.subf %31, %34 : vector<8x128xf32>
    %36 = math.exp %35 : vector<8x128xf32>
    %cst_21 = arith.constant dense<0.000000e+00> : vector<8xf32>
    %37 = vector.multi_reduction <add>, %36, %cst_21 [1] : vector<8x128xf32> to vector<8xf32>
    %38 = vector.shape_cast %37 : vector<8xf32> to vector<8x1xf32>
    %39 = math.log %38 : vector<8x1xf32>
    %40 = vector.broadcast %39 : vector<8x1xf32> to vector<8x128xf32>
    %41 = arith.subf %35, %40 : vector<8x128xf32>
    %c0_22 = arith.constant 0 : index
    %c0_23 = arith.constant 0 : index
    %42 = vector.load %arg6[%c0_22, %c0_23] : memref<8x128xf32, #tpu.memory_space<vmem>>, vector<8x128xf32>
    tpu.vector_store %arg6[%c0_22, %c0_23], %41 {strides = array<i32>} : memref<8x128xf32, #tpu.memory_space<vmem>>, vector<8x128xf32>,
    %43 = vector.broadcast %33 : vector<8x1xf32> to vector<8x128xf32>
    %44 = arith.cmpf oge, %31, %43 : vector<8x128xf32>
    %c128_i32 = arith.constant 128 : i32
    %45 = vector.broadcast %c128_i32 : i32 to vector<8x128xi32>
    %46 = arith.select %44, %23, %45 : vector<8x128xi1>, vector<8x128xi32>
    %cst_24 = arith.constant dense<2147483647> : vector<8xi32>
    %47 = vector.multi_reduction <minsi>, %46, %cst_24 [1] : vector<8x128xi32> to vector<8xi32>
    %48 = vector.shape_cast %47 : vector<8xi32> to vector<8x1xi32>
    %c0_25 = arith.constant 0 : index
    %c0_26 = arith.constant 0 : index
    %49 = vector.load %arg0[%c0_25, %c0_26] : memref<8x128xi32, #tpu.memory_space<vmem>>, vector<8x128xi32>
    %c9_i32 = arith.constant 9 : i32
    %50 = vector.broadcast %c9_i32 : i32 to vector<8x128xi32>
    %51 = arith.shrui %49, %50 : vector<8x128xi32>
    %c1065353216_i32 = arith.constant 1065353216 : i32
    %52 = vector.broadcast %c1065353216_i32 : i32 to vector<8x128xi32>
    %53 = arith.ori %51, %52 : vector<8x128xi32>
    %54 = tpu.bitcast %53 : vector<8x128xi32> -> vector<8x128xf32>
    %cst_27 = arith.constant 1.000000e+00 : f32
    %55 = vector.broadcast %cst_27 : f32 to vector<8x128xf32>
    %56 = arith.subf %54, %55 : vector<8x128xf32>
    %57 = math.log %56 : vector<8x128xf32>
    %cst_28 = arith.constant 0.000000e+00 : f32
    %58 = vector.broadcast %cst_28 : f32 to vector<8x128xf32>
    %59 = arith.subf %58, %57 : vector<8x128xf32>
    %60 = math.log %59 : vector<8x128xf32>
    %cst_29 = arith.constant 0.000000e+00 : f32
    %61 = vector.broadcast %cst_29 : f32 to vector<8x128xf32>
    %62 = arith.subf %61, %60 : vector<8x128xf32>
    %63 = arith.addf %41, %62 : vector<8x128xf32>
    %cst_30 = arith.constant dense<0xFF800000> : vector<8xf32>
    %64 = vector.multi_reduction <maximumf>, %63, %cst_30 [1] : vector<8x128xf32> to vector<8xf32>
    %65 = vector.shape_cast %64 : vector<8xf32> to vector<8x1xf32>
    %66 = vector.broadcast %65 : vector<8x1xf32> to vector<8x128xf32>
    %67 = arith.cmpf oge, %63, %66 : vector<8x128xf32>
    %c128_i32_31 = arith.constant 128 : i32
    %68 = vector.broadcast %c128_i32_31 : i32 to vector<8x128xi32>
    %69 = arith.select %67, %23, %68 : vector<8x128xi1>, vector<8x128xi32>
    %cst_32 = arith.constant dense<2147483647> : vector<8xi32>
    %70 = vector.multi_reduction <minsi>, %69, %cst_32 [1] : vector<8x128xi32> to vector<8xi32>
    %71 = vector.shape_cast %70 : vector<8xi32> to vector<8x1xi32>
    %72 = vector.broadcast %71 : vector<8x1xi32> to vector<8x128xi32>
    %73 = arith.cmpi eq, %23, %72 : vector<8x128xi32>
    %cst_33 = arith.constant 0xFF800000 : f32
    %74 = vector.broadcast %cst_33 : f32 to vector<8x128xf32>
    %75 = arith.select %73, %41, %74 : vector<8x128xi1>, vector<8x128xf32>
    %cst_34 = arith.constant dense<0xFF800000> : vector<8xf32>
    %76 = vector.multi_reduction <maximumf>, %75, %cst_34 [1] : vector<8x128xf32> to vector<8xf32>
    %77 = vector.shape_cast %76 : vector<8xf32> to vector<8x1xf32>
    %c0_i32 = arith.constant 0 : i32
    %78 = vector.broadcast %c0_i32 : i32 to vector<8x128xi32>
    %79 = arith.cmpi eq, %23, %78 : vector<8x128xi32>
    %80 = arith.sitofp %71 : vector<8x1xi32> to vector<8x1xf32>
    %cst_35 = arith.constant 0.000000e+00 : f32
    %81 = vector.shape_cast %80 : vector<8x1xf32> to vector<8x1xf32>
    %82 = vector.broadcast %81 : vector<8x1xf32> to vector<8x128xf32>
    %83 = vector.broadcast %cst_35 : f32 to vector<8x128xf32>
    %84 = arith.select %79, %82, %83 : vector<8x128xi1>, vector<8x128xf32>
    %c1_i32 = arith.constant 1 : i32
    %85 = vector.broadcast %c1_i32 : i32 to vector<8x128xi32>
    %86 = arith.cmpi eq, %23, %85 : vector<8x128xi32>
    %cst_36 = arith.constant 0.000000e+00 : f32
    %87 = vector.shape_cast %77 : vector<8x1xf32> to vector<8x1xf32>
    %88 = vector.broadcast %87 : vector<8x1xf32> to vector<8x128xf32>
    %89 = vector.broadcast %cst_36 : f32 to vector<8x128xf32>
    %90 = arith.select %86, %88, %89 : vector<8x128xi1>, vector<8x128xf32>
    %91 = arith.addf %84, %90 : vector<8x128xf32>
    %c2_i32 = arith.constant 2 : i32
    %92 = vector.broadcast %c2_i32 : i32 to vector<8x128xi32>
    %93 = arith.cmpi eq, %23, %92 : vector<8x128xi32>
    %94 = arith.sitofp %48 : vector<8x1xi32> to vector<8x1xf32>
    %cst_37 = arith.constant 0.000000e+00 : f32
    %95 = vector.shape_cast %94 : vector<8x1xf32> to vector<8x1xf32>
    %96 = vector.broadcast %95 : vector<8x1xf32> to vector<8x128xf32>
    %97 = vector.broadcast %cst_37 : f32 to vector<8x128xf32>
    %98 = arith.select %93, %96, %97 : vector<8x128xi1>, vector<8x128xf32>
    %99 = arith.addf %91, %98 : vector<8x128xf32>
    %c0_38 = arith.constant 0 : index
    %c0_39 = arith.constant 0 : index
    %100 = vector.load %arg7[%c0_38, %c0_39] : memref<8x128xf32, #tpu.memory_space<vmem>>, vector<8x128xf32>
    tpu.vector_store %arg7[%c0_38, %c0_39], %99 {strides = array<i32>} : memref<8x128xf32, #tpu.memory_space<vmem>>, vector<8x128xf32>,
    return
  }
}

</mosaic_0001>

<bundles_post_ra>
// kernel: policy_forward.1
= control target key start
LH: loop header
LB: loop body
LE: loop exit
PB: predicated region body
PF: predicated region fallthrough
CT: control target
= control target key end

     0   :  { %13 = vsyncpa [#allocation3], 0  ;;  %s1409_s0 = inlined_call_operand.vmem [shape: u32[8,128], index: 0, kind: input, shape index: {}]   ;;  %s1410_s1 = inlined_call_operand.vmem [shape: bf16[8,128], index: 1, kind: input, shape index: {}]   ;;  %s1411_s2 = inlined_call_operand.hbm [shape: bf16[640,128], index: 2, kind: input, shape index: {}]   ;;  %s1412_s3 = inlined_call_operand.hbm [shape: bf16[128,512], index: 3, kind: input, shape index: {}]   ;;  %s1413_s4 = inlined_call_operand.vmem [shape: f32[1,768], index: 4, kind: input, shape index: {}]   ;;  %s1414_s5 = inlined_call_operand.hbm [shape: f32[8,128], index: 5, kind: output, shape index: {0}]   ;;  %s1415_s6 = inlined_call_operand.hbm [shape: f32[8,128], index: 6, kind: output, shape index: {1}]   ;;  %s1416_s7 = inlined_call_operand.vmem [shape: f32[8,128], index: 7, kind: output, shape index: {2}]  }
   0x1   :  { %14 = vsyncpa [#allocation6], 0 }
   0x2   :  { %15 = vsyncpa [#allocation4], 0 }
   0x3   :  { %16 = vsyncpa [#allocation9], 0  ;;  %s1279_s24 = smov [#allocation2]   ;;  %s1183_s28 = scalar_lea.hbm %s1411_s2, 5120 }
   0x4   :  { %s26_s25 = sshll.u32 %s1279_s24, 4  ;;  %p1184_p0 = scmp.ne.s32.totalorder %s1411_s2, %s1183_s28  ;;  %s27_s25 = int_to_ptr.vmem [resolvable:$true] %s26_s25 }
   0x5   :  { %p1187_p1 = scmp.lt.u32.totalorder %s1183_s28, %s1411_s2 }
   0x7   :  { %p1189_p2 = pnand %p1187_p1, %p1184_p0 }
   0x9   :  { %1192 = shalt.err (!%p1189_p2)
}
   0xa   :  { %s1193_s10 = scalar_lea.vmem %s27_s25, 5120  ;;  %p1198_p4 = scmp.lt.s32.totalorder %s27_s25, %s27_s25 }
   0xb   :  { %p1194_p3 = scmp.ne.s32.totalorder %s27_s25, %s1193_s10  ;;  %p1199_p5 = scmp.lt.s32.totalorder %s1193_s10, %s1193_s10 }
   0xd   :  { %p1200_p6 = por %p1199_p5, %p1198_p4 }
   0xf   :  { %p1201_p7 = pnand %p1200_p6, %p1194_p3 }
  0x11   :  { %1204 = shalt.err (!%p1201_p7)
}
  0x12   :  { %s1280_s11 = smov 64   ;;  %s1281_s12 = smov 4  }
  0x13   :  { %32 = dma.hbm_to_vmem [thread:$0]  %s1411_s2, 5120, %s27_s25, [#allocation3], %s1280_s11, %s1280_s11, %s1281_s12  }
  0x14   :  { %s1282_s15 = smov [#allocation5]   ;;  %s1205_s19 = scalar_lea.hbm %s1412_s3, 4096 }
  0x15   :  { %s38_s16 = sshll.u32 %s1282_s15, 4  ;;  %p1206_p8 = scmp.ne.s32.totalorder %s1412_s3, %s1205_s19  ;;  %s39_s16 = int_to_ptr.vmem [resolvable:$true] %s38_s16 }
  0x16   :  { %p1209_p9 = scmp.lt.u32.totalorder %s1205_s19, %s1412_s3 }
  0x18   :  { %p1211_p10 = pnand %p1209_p9, %p1206_p8 }
  0x1a   :  { %1214 = shalt.err (!%p1211_p10)
}
  0x1b   :  { %s1215_s24 = scalar_lea.vmem %s39_s16, 4096  ;;  %p1220_p12 = scmp.lt.s32.totalorder %s39_s16, %s39_s16 }
  0x1c   :  { %p1216_p11 = scmp.ne.s32.totalorder %s39_s16, %s1215_s24  ;;  %p1221_p13 = scmp.lt.s32.totalorder %s1215_s24, %s1215_s24 }
  0x1e   :  { %p1222_p0 = por %p1221_p13, %p1220_p12 }
  0x20   :  { %p1223_p1 = pnand %p1222_p0, %p1216_p11 }
  0x22   :  { %1226 = shalt.err (!%p1223_p1)
}
  0x23   :  { %s1283_s2 = smov 256   ;;  %s1284_s25 = smov 16  }
  0x24   :  { %44 = dma.hbm_to_vmem [thread:$0]  %s1412_s3, 4096, %s39_s16, [#allocation6], %s1283_s2, %s1283_s2, %s1284_s25  }
  0x25   :  { %1271 = dma.done.wait [#allocation3], 5120  }
  0x26   :  { %1272 = vsyncadd [#allocation3], 4294962176 }
  0x27   :  { %1273 = dma.done.wait [#allocation6], 4096  }
  0x28   :  { %1274 = vsyncadd [#allocation6], 4294963200  ;;  %v1285_v0 = vmov 0.0   ;;  %vm1286_vm0 = vmmov 0   ;;  %v1087_v1 = vld [vmem:[#allocation2] sm:$0xff]   ;;  %v1088_v2 = vld [vmem:[#allocation2 + $0x8] sm:$0xff]  }
  0x29   :  { %1056 = vmatprep.subr.bf16.mxu0 %v1285_v0  ;;  %1072 = vmatprep.mubr.msk.bf16.mxu0 %vm1286_vm0, %v1285_v0  ;;  %v1089_v3 = vld [vmem:[#allocation2 + $0x10] sm:$0xff]   ;;  %v1090_v5 = vld [vmem:[#allocation2 + $0x18] sm:$0xff]   ;;  %v1091_v8 = vld [vmem:[#allocation2 + $0x20] sm:$0xff]   ;;  %v1287_v42 = vmov 0   ;;  %s1289_s13 = smov [#allocation8]  }
  0x2a   :  { %1057 = vmatpush3.bf16.msra.mxu0 %v1087_v1  ;;  %v1095_v4 = vld [vmem:[#allocation5 + $0x4] ss:$16 sps:$4 sm:$0xff]   ;;  %v1100_v6 = vld [vmem:[#allocation5] ss:$16 sps:$4 sm:$0xff]   ;;  %v1092_v13 = vld [vmem:[#allocation2 + $0x28] sm:$0xff]   ;;  %479 = vmatprep.mubr.bf16.mxu1 %v1287_v42  ;;  %s910_s14 = sshll.u32 %s1289_s13, 4  ;;  %s911_s14 = int_to_ptr.vmem [resolvable:$true] %s910_s14 }
  0x2b   :  { %1058 = vmatprep.subr.bf16.mxu0 %v1285_v0  ;;  %447 = vmatprep.subr.bf16.mxu1 %v1095_v4  ;;  %v1101_v7 = vld [vmem:[#allocation5 + $0x24] ss:$16 sps:$4 sm:$0xff]   ;;  %v1106_v9 = vld [vmem:[#allocation5 + $0x20] ss:$16 sps:$4 sm:$0xff]   ;;  %v1094_v19 = vld [vmem:[#allocation2 + $0x38] sm:$0xff]  }
  0x2c   :  { %448 = vmatpush1.bf16.msra.mxu1 %v1100_v6  ;;  %v1107_v10 = vld [vmem:[#allocation5 + $0x44] ss:$16 sps:$4 sm:$0xff]   ;;  %v1112_v11 = vld [vmem:[#allocation5 + $0x40] ss:$16 sps:$4 sm:$0xff]   ;;  %v1099_v20 = vld [vmem:[#allocation5 + $0xc] ss:$16 sps:$4 sm:$0xff]  }
  0x2d   :  { %449 = vmatprep.subr.bf16.mxu1 %v1101_v7  ;;  %v1113_v12 = vld [vmem:[#allocation5 + $0x64] ss:$16 sps:$4 sm:$0xff]   ;;  %v1118_v14 = vld [vmem:[#allocation5 + $0x60] ss:$16 sps:$4 sm:$0xff]   ;;  %v1097_v24 = vld [vmem:[#allocation5 + $0x8] ss:$16 sps:$4 sm:$0xff]  }
  0x2e   :  { %1059 = vmatpush3.bf16.msra.mxu0 %v1088_v2  ;;  %v1119_v15 = vld [vmem:[#allocation5 + $0x84] ss:$16 sps:$4 sm:$0xff]   ;;  %v1124_v17 = vld [vmem:[#allocation5 + $0x80] ss:$16 sps:$4 sm:$0xff]   ;;  %v1105_v25 = vld [vmem:[#allocation5 + $0x2c] ss:$16 sps:$4 sm:$0xff]  }
  0x2f   :  { %1060 = vmatprep.subr.bf16.mxu0 %v1285_v0  ;;  %v1093_v16 = vld [vmem:[#allocation2 + $0x30] sm:$0xff]   ;;  %v137_v23 = vld [vmem:[%s1410_s1] sm:$0xf]  ;;  %v1103_v26 = vld [vmem:[#allocation5 + $0x28] ss:$16 sps:$4 sm:$0xff]  }
  0x30   :  { %450 = vmatpush1.bf16.msra.mxu1 %v1106_v9  ;;  %v1125_v18 = vld [vmem:[#allocation5 + $0xa4] ss:$16 sps:$4 sm:$0xff]   ;;  %v1130_v21 = vld [vmem:[#allocation5 + $0xa0] ss:$16 sps:$4 sm:$0xff]   ;;  %v1111_v27 = vld [vmem:[#allocation5 + $0x4c] ss:$16 sps:$4 sm:$0xff]  }
  0x31   :  { %451 = vmatprep.subr.bf16.mxu1 %v1107_v10  ;;  %v1131_v22 = vld [vmem:[#allocation5 + $0xc4] ss:$16 sps:$4 sm:$0xff]   ;;  %v1109_v28 = vld [vmem:[#allocation5 + $0x48] ss:$16 sps:$4 sm:$0xff]   ;;  %v1117_v29 = vld [vmem:[#allocation5 + $0x6c] ss:$16 sps:$4 sm:$0xff]  }
  0x32   :  { %1061 = vmatpush3.bf16.msra.mxu0 %v1089_v3  ;;  %v1115_v30 = vld [vmem:[#allocation5 + $0x68] ss:$16 sps:$4 sm:$0xff]   ;;  %v1123_v31 = vld [vmem:[#allocation5 + $0x8c] ss:$16 sps:$4 sm:$0xff]   ;;  %v1136_v37 = vld [vmem:[#allocation5 + $0xc0] ss:$16 sps:$4 sm:$0xff]  }
  0x33   :  { %1062 = vmatprep.subr.bf16.mxu0 %v1285_v0  ;;  %v1121_v32 = vld [vmem:[#allocation5 + $0x88] ss:$16 sps:$4 sm:$0xff]   ;;  %v1129_v33 = vld [vmem:[#allocation5 + $0xac] ss:$16 sps:$4 sm:$0xff]   ;;  %v1137_v38 = vld [vmem:[#allocation5 + $0xe4] ss:$16 sps:$4 sm:$0xff]  }
  0x34   :  { %452 = vmatpush1.bf16.msra.mxu1 %v1112_v11  ;;  %v1127_v34 = vld [vmem:[#allocation5 + $0xa8] ss:$16 sps:$4 sm:$0xff]   ;;  %v1135_v35 = vld [vmem:[#allocation5 + $0xcc] ss:$16 sps:$4 sm:$0xff]   ;;  %v1142_v41 = vld [vmem:[#allocation5 + $0xe0] ss:$16 sps:$4 sm:$0xff]  }
  0x35   :  { %453 = vmatprep.subr.bf16.mxu1 %v1113_v12  ;;  %v1133_v36 = vld [vmem:[#allocation5 + $0xc8] ss:$16 sps:$4 sm:$0xff]   ;;  %v1141_v39 = vld [vmem:[#allocation5 + $0xec] ss:$16 sps:$4 sm:$0xff]   ;;  %v1143_v43 = vld [vmem:[#allocation2 + $0x80] sm:$0xff]  }
  0x36   :  { %1063 = vmatpush3.bf16.msra.mxu0 %v1090_v5  ;;  %v1139_v40 = vld [vmem:[#allocation5 + $0xe8] ss:$16 sps:$4 sm:$0xff]   ;;  %v1144_v44 = vld [vmem:[#allocation2 + $0x100] sm:$0xff]   ;;  %v1151_v59 = vld [vmem:[#allocation2 + $0x90] sm:$0xff]  }
  0x37   :  { %1064 = vmatprep.subr.bf16.mxu0 %v1285_v0  ;;  %v928_v45 = vld [vmem:[%s1413_s4] ss:$0 sm:$0xff]  ;;  %v1147_v55 = vld [vmem:[#allocation2 + $0x88] sm:$0xff]   ;;  %v1152_v60 = vld [vmem:[#allocation2 + $0x110] sm:$0xff]  }
  0x38   :  { %454 = vmatpush1.bf16.msra.mxu1 %v1118_v14  ;;  %v1145_v52 = vld [vmem:[#allocation2 + $0x40] sm:$0xff]   ;;  %v1148_v56 = vld [vmem:[#allocation2 + $0x108] sm:$0xff]   ;;  %v1153_v61 = vld [vmem:[#allocation2 + $0x50] sm:$0xff]  }
  0x39   :  { %455 = vmatprep.subr.bf16.mxu1 %v1119_v15  ;;  %v1146_v53 = vld [vmem:[#allocation2 + $0xc0] sm:$0xff]   ;;  %v1149_v57 = vld [vmem:[#allocation2 + $0x48] sm:$0xff]   ;;  %v1154_v62 = vld [vmem:[#allocation2 + $0xd0] sm:$0xff]  }
  0x3a   :  { %1065 = vmatpush3.bf16.msra.mxu0 %v1091_v8  ;;  %v1150_v58 = vld [vmem:[#allocation2 + $0xc8] sm:$0xff]   ;;  %v1155_v63 = vld [vmem:[#allocation2 + $0x98] sm:$0xff]   ;;  %v1159_v3 = vld [vmem:[#allocation2 + $0xa0] sm:$0xff]  }
  0x3b   :  { %1066 = vmatprep.subr.bf16.mxu0 %v1285_v0  ;;  %v1157_v1 = vld [vmem:[#allocation2 + $0x58] sm:$0xff]   ;;  %v1160_v4 = vld [vmem:[#allocation2 + $0x120] sm:$0xff]   ;;  %v1163_v7 = vld [vmem:[#allocation2 + $0xa8] sm:$0xff]  }
  0x3c   :  { %456 = vmatpush1.bf16.msra.mxu1 %v1124_v17  ;;  %v1158_v2 = vld [vmem:[#allocation2 + $0xd8] sm:$0xff]   ;;  %v1161_v5 = vld [vmem:[#allocation2 + $0x60] sm:$0xff]   ;;  %v1164_v8 = vld [vmem:[#allocation2 + $0x128] sm:$0xff]  }
  0x3d   :  { %457 = vmatprep.subr.bf16.mxu1 %v1125_v18  ;;  %v1162_v6 = vld [vmem:[#allocation2 + $0xe0] sm:$0xff]   ;;  %v1165_v9 = vld [vmem:[#allocation2 + $0x68] sm:$0xff]   ;;  %v1167_v11 = vld [vmem:[#allocation2 + $0xb0] sm:$0xff]  }
  0x3e   :  { %1067 = vmatpush3.bf16.msra.mxu0 %v1092_v13  ;;  %v1166_v10 = vld [vmem:[#allocation2 + $0xe8] sm:$0xff]   ;;  %v1168_v12 = vld [vmem:[#allocation2 + $0x130] sm:$0xff]   ;;  %v1171_v15 = vld [vmem:[#allocation2 + $0xb8] sm:$0xff]  }
  0x3f   :  { %1068 = vmatprep.subr.bf16.mxu0 %v1285_v0  ;;  %v1169_v13 = vld [vmem:[#allocation2 + $0x70] sm:$0xff]   ;;  %v1173_v17 = vld [vmem:[#allocation2 + $0x78] sm:$0xff]  }
  0x40   :  { %458 = vmatpush1.bf16.msra.mxu1 %v1130_v21  ;;  %v1170_v14 = vld [vmem:[#allocation2 + $0xf0] sm:$0xff]   ;;  %v1174_v18 = vld [vmem:[#allocation2 + $0xf8] sm:$0xff]  }
  0x41   :  { %459 = vmatprep.subr.bf16.mxu1 %v1131_v22 }
  0x42   :  { %1069 = vmatpush3.bf16.msra.mxu0 %v1093_v16  ;;  %v1172_v16 = vld [vmem:[#allocation2 + $0x138] sm:$0xff]  }
  0x43   :  { %1070 = vmatprep.subr.bf16.mxu0 %v1285_v0  ;;  %v1156_v0 = vld [vmem:[#allocation2 + $0x118] sm:$0xff]  }
  0x44   :  { %460 = vmatpush1.bf16.msra.mxu1 %v1136_v37 }
  0x45   :  { %461 = vmatprep.subr.bf16.mxu1 %v1137_v38 }
  0x46   :  { %1071 = vmatpush3.bf16.msra.mxu0 %v1094_v19  ;;  %v267_v19 = vlaneseq }
  0x47   :  { %488 = vmatprep.subr.bf16.mxu0 %v1099_v20 }
  0x48   :  { %462 = vmatpush1.bf16.msra.mxu1 %v1142_v41  ;;  %v268_v20 = vshrl.u32 %v267_v19, 7 }
  0x49   :  { %1073 = vmatmul.mubr.bf16.vlgmr.msra.gmra.mrb[0].mxu0 %v137_v23  ;;  %1012 = vmatprep.subr.bf16.mxu1 %v1143_v43  ;;  %v135_v23 = vld [vmem:[%s1413_s4 + $0x1] sm:$0xf] }
  0x4a   :  { %489 = vmatpush1.bf16.msra.mxu0 %v1097_v24  ;;  %520 = vmatprep.mubr.bf16.mxu0 %v1287_v42  ;;  %v269_v21 = vsub.s32 0, %v268_v20  ;;  %v277_v22 = vsub.s32 2, %v268_v20  ;;  %v273_v24 = vsub.s32 1, %v268_v20 }
  0x4b   :  { %490 = vmatprep.subr.bf16.mxu0 %v1105_v25  ;;  %v281_v25 = vsub.s32 3, %v268_v20 }
  0x4e   :  { %491 = vmatpush1.bf16.msra.mxu0 %v1103_v26  ;;  %v270_v26 = vrot.slane %v135_v23, %v269_v21 }
  0x4f   :  { %492 = vmatprep.subr.bf16.mxu0 %v1111_v27  ;;  %v278_v27 = vrot.slane %v135_v23, %v277_v22 }
  0x52   :  { %493 = vmatpush1.bf16.msra.mxu0 %v1109_v28  ;;  %v274_v28 = vrot.slane %v135_v23, %v273_v24 }
  0x53   :  { %494 = vmatprep.subr.bf16.mxu0 %v1117_v29  ;;  %v282_v29 = vrot.slane %v135_v23, %v281_v25 }
  0x56   :  { %495 = vmatpush1.bf16.msra.mxu0 %v1115_v30 }
  0x57   :  { %496 = vmatprep.subr.bf16.mxu0 %v1123_v31 }
  0x5a   :  { %497 = vmatpush1.bf16.msra.mxu0 %v1121_v32 }
  0x5b   :  { %498 = vmatprep.subr.bf16.mxu0 %v1129_v33 }
  0x5e   :  { %499 = vmatpush1.bf16.msra.mxu0 %v1127_v34 }
  0x5f   :  { %500 = vmatprep.subr.bf16.mxu0 %v1135_v35 }
  0x62   :  { %501 = vmatpush1.bf16.msra.mxu0 %v1133_v36 }
  0x63   :  { %502 = vmatprep.subr.bf16.mxu0 %v1141_v39 }
  0x66   :  { %503 = vmatpush1.bf16.msra.mxu0 %v1139_v40 }
  0x67   :  { %1034 = vmatprep.subr.bf16.mxu0 %v1144_v44 }
 0x11c   :  { %v226_v46 = vpop.f32.mrb[0].mxu0 }
 0x11d   :  { %v227_v47 = vadd.f32 %v928_v45, %v226_v46  ;;  %v1074_v48 = vpop.f32.mrb[1].mxu0 }
 0x11e   :  { %v229_v49 = vpop.f32.mrb[2].mxu0 }
 0x11f   :  { %v232_v50 = vmax.f32 %v227_v47, 0.0  ;;  %v1075_v51 = vpop.f32.mrb[3].mxu0 }
 0x121   :  { %v233_v54 = vpack.c.bf16 %v232_v50, %v232_v50 }
 0x123   :  { %480 = vmatmul.mubr.bf16.vlgmr.msra.gmra.mrb[0].mxu1 %v233_v54  ;;  %521 = vmatmul.mubr.bf16.vlgmr.msra.gmra.mrb[4].mxu0 %v233_v54 }
 0x124   :  { %1013 = vmatpush3.bf16.msra.mxu1 %v1145_v52  ;;  %1035 = vmatpush3.bf16.msra.mxu0 %v1146_v53  ;;  %v969_v52 = vld [vmem:[%s1413_s4 + $0x5] ss:$0 sm:$0xff] }
 0x125   :  { %1014 = vmatprep.subr.bf16.mxu1 %v1147_v55  ;;  %1036 = vmatprep.subr.bf16.mxu0 %v1148_v56 }
 0x128   :  { %1015 = vmatpush3.bf16.msra.mxu1 %v1149_v57  ;;  %1037 = vmatpush3.bf16.msra.mxu0 %v1150_v58 }
 0x129   :  { %1016 = vmatprep.subr.bf16.mxu1 %v1151_v59  ;;  %1038 = vmatprep.subr.bf16.mxu0 %v1152_v60 }
 0x12c   :  { %1017 = vmatpush3.bf16.msra.mxu1 %v1153_v61  ;;  %1039 = vmatpush3.bf16.msra.mxu0 %v1154_v62  ;;  %v1366_v62 = vand.u32 127, %v267_v19 }
 0x12d   :  { %1018 = vmatprep.subr.bf16.mxu1 %v1155_v63  ;;  %1040 = vmatprep.subr.bf16.mxu0 %v1156_v0 }
 0x12e   :  { %vm818_vm1 = vcmp.lt.s32.totalorder %v1366_v62, 6 }
 0x130   :  { %1019 = vmatpush3.bf16.msra.mxu1 %v1157_v1  ;;  %1041 = vmatpush3.bf16.msra.mxu0 %v1158_v2 }
 0x131   :  { %1020 = vmatprep.subr.bf16.mxu1 %v1159_v3  ;;  %1042 = vmatprep.subr.bf16.mxu0 %v1160_v4 }
 0x134   :  { %1021 = vmatpush3.bf16.msra.mxu1 %v1161_v5  ;;  %1043 = vmatpush3.bf16.msra.mxu0 %v1162_v6 }
 0x135   :  { %1022 = vmatprep.subr.bf16.mxu1 %v1163_v7  ;;  %1044 = vmatprep.subr.bf16.mxu0 %v1164_v8 }
 0x138   :  { %1023 = vmatpush3.bf16.msra.mxu1 %v1165_v9  ;;  %1045 = vmatpush3.bf16.msra.mxu0 %v1166_v10  ;;  %v849_v10 = vld [vmem:[%s1409_s0] sm:$0xff]  ;;  %s1288_s0 = smov [#allocation7]  }
 0x139   :  { %1024 = vmatprep.subr.bf16.mxu1 %v1167_v11  ;;  %1046 = vmatprep.subr.bf16.mxu0 %v1168_v12  ;;  %v850_v11 = vshrl.u32 %v849_v10, 9  ;;  %s900_s12 = sshll.u32 %s1288_s0, 4  ;;  %s901_s12 = int_to_ptr.vmem [resolvable:$true] %s900_s12 }
 0x13a   :  { %s1227_s15 = scalar_lea.vmem %s901_s12, 128  ;;  %p1232_p3 = scmp.lt.s32.totalorder %s901_s12, %s901_s12 }
 0x13b   :  { %v851_v12 = vor.u32 1065353216, %v850_v11  ;;  %p1228_p2 = scmp.ne.s32.totalorder %s901_s12, %s1227_s15  ;;  %p1233_p4 = scmp.lt.s32.totalorder %s1227_s15, %s1227_s15 }
 0x13c   :  { %1025 = vmatpush3.bf16.msra.mxu1 %v1169_v13  ;;  %1047 = vmatpush3.bf16.msra.mxu0 %v1170_v14 }
 0x13d   :  { %1026 = vmatprep.subr.bf16.mxu1 %v1171_v15  ;;  %1048 = vmatprep.subr.bf16.mxu0 %v1172_v16  ;;  %v1002_v13 = vadd.f32 -1.0, %v851_v12  ;;  %p1234_p5 = por %p1233_p4, %p1232_p3 }
 0x13f   :  { %p1235_p6 = pnand %p1234_p5, %p1228_p2 }
 0x140   :  { %1027 = vmatpush3.bf16.msra.mxu1 %v1173_v17  ;;  %1049 = vmatpush3.bf16.msra.mxu0 %v1174_v18 }
 0x1f6   :  { %v481_v30 = vpop.f32.mrb[0].mxu1  ;;  %v522_v31 = vpop.f32.mrb[4].mxu0 }
 0x1f7   :  { %v482_v32 = vadd.f32 %v481_v30, %v270_v26  ;;  %v523_v33 = vadd.f32 %v522_v31, %v278_v27  ;;  %v483_v34 = vpop.f32.mrb[1].mxu1  ;;  %v524_v35 = vpop.f32.mrb[5].mxu0 }
 0x1f8   :  { %v484_v36 = vadd.f32 %v483_v34, %v274_v28  ;;  %v525_v37 = vadd.f32 %v524_v35, %v282_v29  ;;  %v485_v38 = vpop.f32.mrb[2].mxu1  ;;  %v526_v39 = vpop.f32.mrb[6].mxu0 }
 0x1f9   :  { %v529_v40 = vmax.f32 %v482_v32, 0.0  ;;  %v531_v41 = vmax.f32 %v523_v33, 0.0  ;;  %v486_v42 = vpop.f32.mrb[3].mxu1  ;;  %v527_v43 = vpop.f32.mrb[7].mxu0 }
 0x1fa   :  { %v530_v44 = vmax.f32 %v484_v36, 0.0  ;;  %v532_v45 = vmax.f32 %v525_v37, 0.0 }
 0x1fb   :  { %v533_v48 = vpack.c.bf16 %v529_v40, %v529_v40  ;;  %v535_v49 = vpack.c.bf16 %v531_v41, %v531_v41 }
 0x1fc   :  { %v534_v46 = vpack.c.bf16 %v530_v44, %v530_v44  ;;  %v536_v47 = vpack.c.bf16 %v532_v45, %v532_v45 }
 0x1fe   :  { %767 = vmatprep.mubr.bf16.mxu1 %v534_v46  ;;  %807 = vmatprep.mubr.bf16.mxu0 %v536_v47 }
 0x1ff   :  { %768 = vmatmul.mubr.bf16.vlgmr.msra.gmra.mrb[4].mxu1 %v533_v48  ;;  %808 = vmatmul.mubr.bf16.vlgmr.msra.gmra.mrb[8].mxu0 %v535_v49 }
 0x2d2   :  { %v1028_v50 = vpop.f32.mrb[4].mxu1  ;;  %v1050_v51 = vpop.f32.mrb[8].mxu0 }
 0x2d3   :  { %v1029_v53 = vpop.f32.mrb[5].mxu1  ;;  %v1051_v54 = vpop.f32.mrb[9].mxu0 }
 0x2d4   :  { %v1030_v55 = vadd.f32 %v1029_v53, %v1028_v50  ;;  %v1052_v56 = vadd.f32 %v1051_v54, %v1050_v51  ;;  %v1031_v57 = vpop.f32.mrb[6].mxu1  ;;  %v1053_v58 = vpop.f32.mrb[10].mxu0 }
 0x2d5   :  { %v1032_v59 = vpop.f32.mrb[7].mxu1  ;;  %v1054_v60 = vpop.f32.mrb[11].mxu0 }
 0x2d6   :  { %v770_v61 = vadd.f32 %v1030_v55, %v969_v52 }
 0x2d8   :  { %v810_v63 = vadd.f32 %v1052_v56, %v770_v61 }
 0x2da   :  { %815 = vst [vmem:[#allocation7] sm:$0xff] %v810_v63  ;;  %v819_v0 = vmax.f32 %v810_v63, -20.0 }
 0x2dc   :  { %v820_v1 = vmin.f32 %v819_v0, 2.0 }
 0x2de   :  { %v821_v2 = vsel %vm818_vm1, %v820_v1, -inf }
 0x2df   :  { %822 = vmax.xlane.f32.xlu0 %v821_v2 }
 0x36c   :  { %v823_v3 = vpop.xlane.xlu0 %822 }
 0x36d   :  { %v824_v4 = vsub.f32 %v821_v2, %v823_v3  ;;  %vm833_vm2 = vcmp.ge.f32.partialorder %v821_v2, %v823_v3 }
 0x36e   :  { %v834_v6 = vsel %vm833_vm2, %v1366_v62, 128 }
 0x36f   :  { %v825_v5 = vmul.f32 1.442695, %v824_v4  ;;  %v836_v7 = vshra.s32 %v834_v6, 16  ;;  %v835_v18 = vand.u32 65535, %v834_v6 }
 0x371   :  { %1175 = vpow2.f32 %v825_v5  ;;  %v838_v9 = vcvt.s32.f32 %v836_v7  ;;  %v837_v20 = vcvt.s32.f32 %v835_v18 }
 0x372   :  { %1177 = vlog2.f32 %v1002_v13 }
 0x37b   :  { %v1176_v8 = vpop.eup %1175 }
 0x37c   :  { %827 = vadd.xlane.f32.xlu0 %v1176_v8  ;;  %v1178_v14 = vpop.eup %1177 }
 0x37d   :  { %v855_v15 = vmul.f32 0.6931472, %v1178_v14 }
 0x37f   :  { %v856_v16 = vsub.f32 0.0, %v855_v15 }
 0x380   :  { %839 = vmin.xlane.f32.xlu0 %v838_v9 }
 0x381   :  { %1179 = vlog2.f32 %v856_v16 }
 0x38b   :  { %v1180_v21 = vpop.eup %1179 }
 0x38c   :  { %v858_v23 = vmul.f32 0.6931472, %v1180_v21 }
 0x38e   :  { %v859_v26 = vsub.f32 0.0, %v858_v23 }
 0x409   :  { %v828_v17 = vpop.xlane.xlu0 %827 }
 0x40a   :  { %1181 = vlog2.f32 %v828_v17 }
 0x40d   :  { %v1373_v19 = vpop.xlane.xlu0 %839 }
 0x40e   :  { %vm841_vm3 = vcmp.eq.f32.partialorder %v838_v9, %v1373_v19 }
 0x40f   :  { %v842_v22 = vsel %vm841_vm3, %v837_v20, inf }
 0x410   :  { %843 = vmin.xlane.f32.xlu0 %v842_v22 }
 0x414   :  { %v1182_v24 = vpop.eup %1181 }
 0x415   :  { %v830_v25 = vmul.f32 0.6931472, %v1182_v24 }
 0x417   :  { %v831_v27 = vsub.f32 %v824_v4, %v830_v25 }
 0x419   :  { %832 = vst [vmem:[#allocation8] sm:$0xff] %v831_v27  ;;  %v860_v28 = vadd.f32 %v859_v26, %v831_v27 }
 0x41b   :  { %861 = vmax.xlane.f32.xlu1 %v860_v28 }
 0x4a8   :  { %v862_v29 = vpop.xlane.xlu1 %861 }
 0x4a9   :  { %vm863_vm4 = vcmp.ge.f32.partialorder %v860_v28, %v862_v29 }
 0x4aa   :  { %v864_v30 = vsel %vm863_vm4, %v1366_v62, 128 }
 0x4ab   :  { %v866_v31 = vshra.s32 %v864_v30, 16  ;;  %v865_v33 = vand.u32 65535, %v864_v30 }
 0x4ad   :  { %v868_v32 = vcvt.s32.f32 %v866_v31  ;;  %v867_v35 = vcvt.s32.f32 %v865_v33 }
 0x4af   :  { %869 = vmin.xlane.f32.xlu1 %v868_v32 }
 0x53c   :  { %v870_v34 = vpop.xlane.xlu1 %869 }
 0x53d   :  { %vm871_vm5 = vcmp.eq.f32.partialorder %v868_v32, %v870_v34  ;;  %v876_v37 = vcvt.f32.s32 %v870_v34 }
 0x53e   :  { %v872_v36 = vsel %vm871_vm5, %v867_v35, inf }
 0x53f   :  { %873 = vmin.xlane.f32.xlu1 %v872_v36  ;;  %v877_v39 = vshll.u32 %v876_v37, 16 }
 0x5cc   :  { %v874_v38 = vpop.xlane.xlu1 %873 }
 0x5cd   :  { %v875_v40 = vcvt.f32.s32 %v874_v38 }
 0x5cf   :  { %v878_v41 = vadd.s32 %v877_v39, %v875_v40 }
 0x5d1   :  { %vm879_vm6 = vcmp.eq.s32.totalorder %v1366_v62, %v878_v41 }
 0x5d2   :  { %v880_v42 = vsel %vm879_vm6, %v831_v27, -inf }
 0x5d3   :  { %881 = vmax.xlane.f32.xlu1 %v880_v42 }
 0x5d4   :  { %1238 = shalt.err (!%p1235_p6)
}
 0x5d5   :  { %s1239_s18 = scalar_lea.hbm %s1414_s5, 128 }
 0x5d6   :  { %p1240_p7 = scmp.ne.s32.totalorder %s1414_s5, %s1239_s18  ;;  %p1243_p8 = scmp.lt.u32.totalorder %s1239_s18, %s1414_s5 }
 0x5d8   :  { %p1245_p9 = pnand %p1243_p8, %p1240_p7 }
 0x5da   :  { %1248 = shalt.err (!%p1245_p9)
}
 0x5db   :  { %903 = dma.vmem_to_hbm [thread:$0]  %s901_s12, 128, %s1414_s5, [#allocation4]  }
 0x5dc   :  { %s1249_s2 = scalar_lea.vmem %s911_s14, 128  ;;  %p1254_p11 = scmp.lt.s32.totalorder %s911_s14, %s911_s14 }
 0x5dd   :  { %p1250_p10 = scmp.ne.s32.totalorder %s911_s14, %s1249_s2  ;;  %p1255_p12 = scmp.lt.s32.totalorder %s1249_s2, %s1249_s2 }
 0x5df   :  { %p1256_p13 = por %p1255_p12, %p1254_p11 }
 0x5e1   :  { %p1257_p0 = pnand %p1256_p13, %p1250_p10 }
 0x5e3   :  { %1260 = shalt.err (!%p1257_p0)
}
 0x5e4   :  { %s1261_s27 = scalar_lea.hbm %s1415_s6, 128 }
 0x5e5   :  { %p1262_p1 = scmp.ne.s32.totalorder %s1415_s6, %s1261_s27  ;;  %p1265_p2 = scmp.lt.u32.totalorder %s1261_s27, %s1415_s6 }
 0x5e7   :  { %p1267_p3 = pnand %p1265_p2, %p1262_p1 }
 0x5e9   :  { %1270 = shalt.err (!%p1267_p3)
}
 0x5ea   :  { %913 = dma.vmem_to_hbm [thread:$0]  %s911_s14, 128, %s1415_s6, [#allocation9]   ;;  %v844_v43 = vpop.xlane.xlu0 %843  ;;  %v846_v44 = vcvt.f32.s32 %v1373_v19  ;;  %v884_v48 = vcvt.s32.f32 %v878_v41  ;;  %vm883_vm7 = vcmp.eq.s32.totalorder %v1366_v62, 0  ;;  %vm886_vm8 = vcmp.eq.s32.totalorder %v1366_v62, 1 }
 0x5eb   :  { %v845_v45 = vcvt.f32.s32 %v844_v43  ;;  %vm889_vm9 = vcmp.eq.s32.totalorder %v1366_v62, 2 }
 0x5ec   :  { %v847_v46 = vshll.u32 %v846_v44, 16  ;;  %v885_v51 = vsel %vm883_vm7, %v884_v48, 0.0 }
 0x5ee   :  { %v848_v47 = vadd.s32 %v847_v46, %v845_v45 }
 0x5f0   :  { %v890_v49 = vcvt.s32.f32 %v848_v47 }
 0x5f2   :  { %v891_v54 = vsel %vm889_vm9, %v890_v49, 0.0 }
 0x660   :  { %v882_v50 = vpop.xlane.xlu1 %881 }
 0x661   :  { %v887_v52 = vsel %vm886_vm8, %v882_v50, 0.0 }
 0x662   :  { %v888_v53 = vadd.f32 %v887_v52, %v885_v51 }
 0x664   :  { %v892_v55 = vadd.f32 %v891_v54, %v888_v53 }
 0x666   :  { %893 = vst [vmem:[%s1416_s7] sm:$0xff] %v892_v55 }
 0x667   :  { %1275 = dma.done.wait [#allocation4], 128  }
 0x668   :  { %1276 = vsyncadd [#allocation4], 4294967168 }
 0x669   :  { %1277 = dma.done.wait [#allocation9], 128  }
 0x66a   :  { %1278 = vsyncadd [#allocation9], 4294967168 }
 0x66b   :  { %924 = vsyncpa [#allocation3], 1 }
 0x66c   :  { %925 = vsyncpa [#allocation6], 1 }
 0x66d   :  { %926 = vsyncpa [#allocation4], 1 }
 0x66e   :  { %927 = vsyncpa [#allocation9], 1 }

</bundles_post_ra>
